<compile_context>
chip_gen: v6e
topology: v6e:2x2x1
jax: 0.10.0
libtpu: 0.0.40
codegen_flags: <defaults>
</compile_context>

<pallas_src>
import math

import jax
import jax.numpy as jnp
from jax.experimental import pallas as pl
from jax.experimental.pallas import tpu as pltpu

B, S, H, F = 2, 8, 32, 64          # batch, seq, hidden, FFN intermediate
BS = B * S
VOCAB, TYPE_VOCAB = 100, 2


def _layernorm(x, gamma, beta, eps=1e-12):
    mu = jnp.mean(x, axis=-1, keepdims=True)
    var = jnp.mean((x - mu) ** 2, axis=-1, keepdims=True)
    return (x - mu) * jax.lax.rsqrt(var + eps) * gamma + beta


def encoder_kernel(x_ref, bias_ref, pool_ref,
                   eg_ref, eb_ref,
                   wqkv_ref, bqkv_ref, wo_ref, bo_ref, g1_ref, be1_ref,
                   w1_ref, b1_ref, w2_ref, b2_ref, g2_ref, be2_ref,
                   o_ref):
    # ---- embedding LayerNorm (folded into the kernel) ----
    x = _layernorm(x_ref[0], eg_ref[0], eb_ref[0])            # (BS, H)

    # ---- fused QKV projection (single lane-dense matmul, Q pre-scaled) ----
    qkv = jnp.dot(x, wqkv_ref[0], preferred_element_type=jnp.float32) + bqkv_ref[0]
    q = qkv[:, :H]
    k = qkv[:, H:2 * H]
    v = qkv[:, 2 * H:]

    # ---- single-head self-attention; block-diagonal + padding bias precomputed ----
    scores = jax.lax.dot_general(q, k, (((1,), (1,)), ((), ())),
                                 preferred_element_type=jnp.float32)   # (BS, BS)
    scores = scores + bias_ref[0]
    scores = scores - jnp.max(scores, axis=-1, keepdims=True)
    e = jnp.exp(scores)
    p = e * pl.reciprocal(jnp.sum(e, axis=-1, keepdims=True), approx=True)
    ctx = jnp.dot(p, v, preferred_element_type=jnp.float32)
    attn = jnp.dot(ctx, wo_ref[0], preferred_element_type=jnp.float32) + bo_ref[0]

    h = _layernorm(x + attn, g1_ref[0], be1_ref[0])

    # ---- feed-forward ----
    f = jnp.dot(h, w1_ref[0], preferred_element_type=jnp.float32) + b1_ref[0]
    f = jax.nn.gelu(f)
    f = jnp.dot(f, w2_ref[0], preferred_element_type=jnp.float32) + b2_ref[0]
    h2 = _layernorm(h + f, g2_ref[0], be2_ref[0])

    # ---- masked mean pooling as one matmul (mask / clamp(sum,1e-9) prefolded) ----
    pooled = jnp.dot(pool_ref[0], h2, preferred_element_type=jnp.float32)  # (B, H)

    # ---- L2 normalize (F.normalize p=2 dim=1; applying twice is idempotent) ----
    inv = jax.lax.rsqrt(jnp.maximum(jnp.sum(pooled * pooled, axis=-1, keepdims=True),
                                    1e-24))
    o_ref[0] = pooled * inv


def encode_fused(stacked_weights, emb, bias, pool):
    """Run E encoders (stacked weights) over their (BS, H) inputs in one call."""
    E = emb.shape[0]

    def wspec(w):
        nd = w.ndim
        return pl.BlockSpec((1,) + w.shape[1:],
                            lambda e, _nd=nd: (e,) + (0,) * (_nd - 1))

    out = pl.pallas_call(
        encoder_kernel,
        out_shape=jax.ShapeDtypeStruct((E, B, H), jnp.float32),
        grid=(E,),
        in_specs=[pl.BlockSpec((1, BS, H), lambda e: (e, 0, 0)),
                  pl.BlockSpec((1, BS, BS), lambda e: (e, 0, 0)),
                  pl.BlockSpec((1, B, BS), lambda e: (e, 0, 0))]
                 + [wspec(w) for w in stacked_weights],
        out_specs=pl.BlockSpec((1, B, H), lambda e: (e, 0, 0)),
        compiler_params=pltpu.CompilerParams(dimension_semantics=("parallel",)),
    )(emb, bias, pool, *stacked_weights)
    return out                                                   # (E, B, H)


def _embed(params, input_ids, token_type_ids):
    """Embedding gathers stay in JAX; LayerNorm is done inside the kernel."""
    emb = (params["word_emb"][input_ids]
           + params["type_emb"][token_type_ids]
           + params["pos_emb"][None, :, :]).astype(jnp.float32)  # (B, S, H)
    return emb.reshape(BS, H)


def _mask_aux(attention_mask):
    """Precompute additive attention bias (BS, BS) and pooling matrix (B, BS)."""
    m = attention_mask.astype(jnp.float32)                       # (B, S)
    key_ok = m.reshape(1, BS)                                    # (1, BS)
    batch_id = jnp.repeat(jnp.arange(B), S)                      # (BS,)
    same = (batch_id[:, None] == batch_id[None, :]).astype(jnp.float32)
    bias = (1.0 - same * key_ok) * (-1e9)                        # (BS, BS)

    denom = jnp.maximum(jnp.sum(m, axis=1, keepdims=True), 1e-9)  # clamp(min=1e-9)
    weights = (m / denom).reshape(1, BS)                         # (1, BS)
    sel = (jnp.arange(B)[:, None] == batch_id[None, :]).astype(jnp.float32)
    pool = sel * weights                                         # (B, BS)
    return bias, pool


_WEIGHT_ORDER = ["eg", "eb", "wqkv", "bqkv", "wo", "bo", "g1", "be1",
                 "w1", "b1", "w2", "b2", "g2", "be2"]


def _prep_encoder_weights(params):
    """Fuse QKV, pre-fold the 1/sqrt(H) score scale into Q, fixed weight order."""
    inv_sqrt = 1.0 / math.sqrt(H)
    wqkv = jnp.concatenate([params["wq"] * inv_sqrt, params["wk"], params["wv"]],
                           axis=1)                               # (H, 3H)
    bqkv = jnp.concatenate([params["bq"] * inv_sqrt, params["bk"], params["bv"]],
                           axis=1)                               # (1, 3H)
    prepped = {
        "eg": params["emb_gamma"].reshape(1, H),
        "eb": params["emb_beta"].reshape(1, H),
        "wqkv": wqkv, "bqkv": bqkv,
        "wo": params["wo"], "bo": params["bo"],
        "g1": params["g1"], "be1": params["be1"],
        "w1": params["w1"], "b1": params["b1"],
        "w2": params["w2"], "b2": params["b2"],
        "g2": params["g2"], "be2": params["be2"],
    }
    return [prepped[n] for n in _WEIGHT_ORDER]


def init_encoder_params(key):
    ks = jax.random.split(key, 12)

    def dense(k, shape, scale=0.02):
        return jax.random.normal(k, shape, jnp.float32) * scale

    return {
        "word_emb": dense(ks[0], (VOCAB, H)),
        "type_emb": dense(ks[1], (TYPE_VOCAB, H)),
        "pos_emb": dense(ks[2], (S, H)),
        "emb_gamma": jnp.ones((H,), jnp.float32),
        "emb_beta": jnp.zeros((H,), jnp.float32),
        "wq": dense(ks[3], (H, H)), "bq": jnp.zeros((1, H), jnp.float32),
        "wk": dense(ks[4], (H, H)), "bk": jnp.zeros((1, H), jnp.float32),
        "wv": dense(ks[5], (H, H)), "bv": jnp.zeros((1, H), jnp.float32),
        "wo": dense(ks[6], (H, H)), "bo": jnp.zeros((1, H), jnp.float32),
        "g1": jnp.ones((1, H), jnp.float32), "be1": jnp.zeros((1, H), jnp.float32),
        "w1": dense(ks[7], (H, F)), "b1": jnp.zeros((1, F), jnp.float32),
        "w2": dense(ks[8], (F, H)), "b2": jnp.zeros((1, H), jnp.float32),
        "g2": jnp.ones((1, H), jnp.float32), "be2": jnp.zeros((1, H), jnp.float32),
    }


class MymodelPallas:
    """Mirrors Mymodel.forward: query encoder + key encoder (separate params)."""

    def __init__(self, seed=0):
        kq, kk = jax.random.split(jax.random.PRNGKey(seed))
        # query encoder params are frozen in torch (requires_grad=False);
        # irrelevant for the forward pass — same math.
        self.query_params = init_encoder_params(kq)
        self.key_params = init_encoder_params(kk)

        q_w = _prep_encoder_weights(self.query_params)
        k_w = _prep_encoder_weights(self.key_params)
        # Single-encoder (E=1) and joint (E=2) stacked weight sets.
        self.query_weights = [w[None] for w in q_w]
        self.key_weights = [w[None] for w in k_w]
        self.joint_weights = [jnp.stack([q, k]) for q, k in zip(q_w, k_w)]

    def _encode_single(self, weights, params, ids, mask, tt):
        emb = _embed(params, ids, tt)[None]                      # (1, BS, H)
        bias, pool = _mask_aux(mask)
        out = encode_fused(weights, emb, bias[None], pool[None])
        return out[0]                                            # (B, H)

    def __call__(self, inp, mode=None):
        if mode is not None:
            s, ms, tks = inp["ids"], inp["mask"], inp["token_type_ids"]
            if mode == "query":
                return self._encode_single(self.query_weights, self.query_params,
                                           s, ms, tks)
            return self._encode_single(self.key_weights, self.key_params,
                                       s, ms, tks)

        # Joint mode: both encoders fused into ONE pallas_call (grid=(2,)).
        q_emb = _embed(self.query_params, inp["query"]["ids"],
                       inp["query"]["token_type_ids"])
        k_emb = _embed(self.key_params, inp["key"]["ids"],
                       inp["key"]["token_type_ids"])
        emb = jnp.stack([q_emb, k_emb])                          # (2, BS, H)
        q_bias, q_pool = _mask_aux(inp["query"]["mask"])
        k_bias, k_pool = _mask_aux(inp["key"]["mask"])
        bias = jnp.stack([q_bias, k_bias])                       # (2, BS, BS)
        pool = jnp.stack([q_pool, k_pool])                       # (2, B, BS)
        out = encode_fused(self.joint_weights, emb, bias, pool)  # (2, B, H)
        return {"query": out[0], "key": out[1]}


if __name__ == "__main__":
    key = jax.random.PRNGKey(0)
    k1, k2 = jax.random.split(key)
    q_ids = jax.random.randint(k1, (B, S), 0, VOCAB, jnp.int32)
    k_ids = jax.random.randint(k2, (B, S), 0, VOCAB, jnp.int32)
    q_mask = jnp.ones((B, S), jnp.int32).at[:, 6:].set(0)        # some padding
    k_mask = jnp.ones((B, S), jnp.int32).at[:, 5:].set(0)
    q_tt = jnp.zeros((B, S), jnp.int32)
    k_tt = jnp.zeros((B, S), jnp.int32)

    model = MymodelPallas(seed=0)

    # joint mode (mode=None): returns {'key': ..., 'query': ...} in one kernel call
    out = model({"query": {"ids": q_ids, "mask": q_mask, "token_type_ids": q_tt},
                 "key": {"ids": k_ids, "mask": k_mask, "token_type_ids": k_tt}})
    jax.block_until_ready(out)

    # single-mode path
    out_q = model({"ids": q_ids, "mask": q_mask, "token_type_ids": q_tt}, mode="query")
    jax.block_until_ready(out_q)

    assert out["query"].shape == (B, H) and out["key"].shape == (B, H)
    assert out_q.shape == (B, H)
    # embeddings are L2-normalized
    assert jnp.allclose(jnp.linalg.norm(out["query"], axis=1), 1.0, atol=1e-4)
    assert jnp.allclose(jnp.linalg.norm(out["key"], axis=1), 1.0, atol=1e-4)
    assert jnp.allclose(jnp.linalg.norm(out_q, axis=1), 1.0, atol=1e-4)
    # single-mode and joint-mode query paths agree
    assert jnp.allclose(out_q, out["query"], atol=1e-4)
    print("KERNEL_OK")
</pallas_src>

<mosaic_0001>
module attributes {stable_mosaic.version = 11 : i64} {
  func.func @encoder_kernel(%arg0: i32, %arg1: memref<1x16x32xf32, #tpu.memory_space<vmem>>, %arg2: memref<1x16x16xf32, #tpu.memory_space<vmem>>, %arg3: memref<1x2x16xf32, #tpu.memory_space<vmem>>, %arg4: memref<1x1x32xf32, #tpu.memory_space<vmem>>, %arg5: memref<1x1x32xf32, #tpu.memory_space<vmem>>, %arg6: memref<1x32x96xf32, #tpu.memory_space<vmem>>, %arg7: memref<1x1x96xf32, #tpu.memory_space<vmem>>, %arg8: memref<1x32x32xf32, #tpu.memory_space<vmem>>, %arg9: memref<1x1x32xf32, #tpu.memory_space<vmem>>, %arg10: memref<1x1x32xf32, #tpu.memory_space<vmem>>, %arg11: memref<1x1x32xf32, #tpu.memory_space<vmem>>, %arg12: memref<1x32x64xf32, #tpu.memory_space<vmem>>, %arg13: memref<1x1x64xf32, #tpu.memory_space<vmem>>, %arg14: memref<1x64x32xf32, #tpu.memory_space<vmem>>, %arg15: memref<1x1x32xf32, #tpu.memory_space<vmem>>, %arg16: memref<1x1x32xf32, #tpu.memory_space<vmem>>, %arg17: memref<1x1x32xf32, #tpu.memory_space<vmem>>, %arg18: memref<1x2x32xf32, #tpu.memory_space<vmem>>) attributes {dimension_semantics = [#tpu.dimension_semantics<parallel>], iteration_bounds = array<i64: 2>, scalar_prefetch = 0 : i64, scratch_operands = 0 : i64, tpu.core_type = #tpu.core_type<tc>, window_params = [{transform_indices = @transform_0, window_bounds = array<i64: 1, 16, 32>}, {transform_indices = @transform_1, window_bounds = array<i64: 1, 16, 16>}, {transform_indices = @transform_2, window_bounds = array<i64: 1, 2, 16>}, {transform_indices = @transform_3, window_bounds = array<i64: 1, 1, 32>}, {transform_indices = @transform_4, window_bounds = array<i64: 1, 1, 32>}, {transform_indices = @transform_5, window_bounds = array<i64: 1, 32, 96>}, {transform_indices = @transform_6, window_bounds = array<i64: 1, 1, 96>}, {transform_indices = @transform_7, window_bounds = array<i64: 1, 32, 32>}, {transform_indices = @transform_8, window_bounds = array<i64: 1, 1, 32>}, {transform_indices = @transform_9, window_bounds = array<i64: 1, 1, 32>}, {transform_indices = @transform_10, window_bounds = array<i64: 1, 1, 32>}, {transform_indices = @transform_11, window_bounds = array<i64: 1, 32, 64>}, {transform_indices = @transform_12, window_bounds = array<i64: 1, 1, 64>}, {transform_indices = @transform_13, window_bounds = array<i64: 1, 64, 32>}, {transform_indices = @transform_14, window_bounds = array<i64: 1, 1, 32>}, {transform_indices = @transform_15, window_bounds = array<i64: 1, 1, 32>}, {transform_indices = @transform_16, window_bounds = array<i64: 1, 1, 32>}, {transform_indices = @transform_17, window_bounds = array<i64: 1, 2, 32>}]} {
    %c0 = arith.constant 0 : index
    %c0_0 = arith.constant 0 : index
    %c0_1 = arith.constant 0 : index
    %0 = vector.load %arg1[%c0, %c0_0, %c0_1] : memref<1x16x32xf32, #tpu.memory_space<vmem>>, vector<1x16x32xf32>
    %1 = vector.shape_cast %0 : vector<1x16x32xf32> to vector<16x32xf32>
    %c0_2 = arith.constant 0 : index
    %c0_3 = arith.constant 0 : index
    %c0_4 = arith.constant 0 : index
    %2 = vector.load %arg4[%c0_2, %c0_3, %c0_4] : memref<1x1x32xf32, #tpu.memory_space<vmem>>, vector<1x1x32xf32>
    %3 = vector.shape_cast %2 : vector<1x1x32xf32> to vector<1x32xf32>
    %c0_5 = arith.constant 0 : index
    %c0_6 = arith.constant 0 : index
    %c0_7 = arith.constant 0 : index
    %4 = vector.load %arg5[%c0_5, %c0_6, %c0_7] : memref<1x1x32xf32, #tpu.memory_space<vmem>>, vector<1x1x32xf32>
    %5 = vector.shape_cast %4 : vector<1x1x32xf32> to vector<1x32xf32>
    %cst = arith.constant dense<0.000000e+00> : vector<16xf32>
    %6 = vector.multi_reduction <add>, %1, %cst [1] : vector<16x32xf32> to vector<16xf32>
    %7 = vector.shape_cast %6 : vector<16xf32> to vector<16x1xf32>
    %cst_8 = arith.constant 3.200000e+01 : f32
    %8 = vector.broadcast %cst_8 : f32 to vector<16x1xf32>
    %9 = arith.divf %7, %8 : vector<16x1xf32>
    %10 = vector.broadcast %9 : vector<16x1xf32> to vector<16x32xf32>
    %11 = arith.subf %1, %10 : vector<16x32xf32>
    %12 = arith.mulf %11, %11 : vector<16x32xf32>
    %cst_9 = arith.constant dense<0.000000e+00> : vector<16xf32>
    %13 = vector.multi_reduction <add>, %12, %cst_9 [1] : vector<16x32xf32> to vector<16xf32>
    %14 = vector.shape_cast %13 : vector<16xf32> to vector<16x1xf32>
    %cst_10 = arith.constant 3.200000e+01 : f32
    %15 = vector.broadcast %cst_10 : f32 to vector<16x1xf32>
    %16 = arith.divf %14, %15 : vector<16x1xf32>
    %17 = vector.broadcast %9 : vector<16x1xf32> to vector<16x32xf32>
    %18 = arith.subf %1, %17 : vector<16x32xf32>
    %cst_11 = arith.constant 9.99999996E-13 : f32
    %19 = vector.broadcast %cst_11 : f32 to vector<16x1xf32>
    %20 = arith.addf %16, %19 : vector<16x1xf32>
    %21 = math.rsqrt %20 : vector<16x1xf32>
    %22 = vector.broadcast %21 : vector<16x1xf32> to vector<16x32xf32>
    %23 = arith.mulf %18, %22 : vector<16x32xf32>
    %24 = vector.broadcast %3 : vector<1x32xf32> to vector<16x32xf32>
    %25 = arith.mulf %23, %24 : vector<16x32xf32>
    %26 = vector.broadcast %5 : vector<1x32xf32> to vector<16x32xf32>
    %27 = arith.addf %25, %26 : vector<16x32xf32>
    %c0_12 = arith.constant 0 : index
    %c0_13 = arith.constant 0 : index
    %c0_14 = arith.constant 0 : index
    %28 = vector.load %arg6[%c0_12, %c0_13, %c0_14] : memref<1x32x96xf32, #tpu.memory_space<vmem>>, vector<1x32x96xf32>
    %29 = vector.shape_cast %28 : vector<1x32x96xf32> to vector<32x96xf32>
    %cst_15 = arith.constant dense<0.000000e+00> : vector<16x96xf32>
    %30 = tpu.matmul %27, %29, %cst_15 {dimension_numbers = #tpu.dot_dimension_numbers<[1], [0], [0], [1], [0, 0, 1, 1], [], []>} : vector<16x32xf32>, vector<32x96xf32>, vector<16x96xf32> -> vector<16x96xf32>
    %c0_16 = arith.constant 0 : index
    %c0_17 = arith.constant 0 : index
    %c0_18 = arith.constant 0 : index
    %31 = vector.load %arg7[%c0_16, %c0_17, %c0_18] : memref<1x1x96xf32, #tpu.memory_space<vmem>>, vector<1x1x96xf32>
    %32 = vector.shape_cast %31 : vector<1x1x96xf32> to vector<1x96xf32>
    %33 = vector.broadcast %32 : vector<1x96xf32> to vector<16x96xf32>
    %34 = arith.addf %30, %33 : vector<16x96xf32>
    %35 = vector.extract_strided_slice %34 {offsets = [0, 0], sizes = [16, 32], strides = [1, 1]} : vector<16x96xf32> to vector<16x32xf32>
    %36 = vector.extract_strided_slice %34 {offsets = [0, 32], sizes = [16, 32], strides = [1, 1]} : vector<16x96xf32> to vector<16x32xf32>
    %37 = vector.extract_strided_slice %34 {offsets = [0, 64], sizes = [16, 32], strides = [1, 1]} : vector<16x96xf32> to vector<16x32xf32>
    %cst_19 = arith.constant dense<0.000000e+00> : vector<16x16xf32>
    %38 = tpu.matmul %35, %36, %cst_19 {dimension_numbers = #tpu.dot_dimension_numbers<[1], [1], [0], [0], [0, 0, 1, 0], [], []>} : vector<16x32xf32>, vector<16x32xf32>, vector<16x16xf32> -> vector<16x16xf32>
    %c0_20 = arith.constant 0 : index
    %c0_21 = arith.constant 0 : index
    %c0_22 = arith.constant 0 : index
    %39 = vector.load %arg2[%c0_20, %c0_21, %c0_22] : memref<1x16x16xf32, #tpu.memory_space<vmem>>, vector<1x16x16xf32>
    %40 = vector.shape_cast %39 : vector<1x16x16xf32> to vector<16x16xf32>
    %41 = arith.addf %38, %40 : vector<16x16xf32>
    %cst_23 = arith.constant dense<0xFF800000> : vector<16xf32>
    %42 = vector.multi_reduction <maximumf>, %41, %cst_23 [1] : vector<16x16xf32> to vector<16xf32>
    %43 = vector.shape_cast %42 : vector<16xf32> to vector<16x1xf32>
    %44 = vector.broadcast %43 : vector<16x1xf32> to vector<16x16xf32>
    %45 = arith.subf %41, %44 : vector<16x16xf32>
    %46 = math.exp %45 : vector<16x16xf32>
    %cst_24 = arith.constant dense<0.000000e+00> : vector<16xf32>
    %47 = vector.multi_reduction <add>, %46, %cst_24 [1] : vector<16x16xf32> to vector<16xf32>
    %48 = vector.shape_cast %47 : vector<16xf32> to vector<16x1xf32>
    %49 = tpu.reciprocal %48 {approx = true} : vector<16x1xf32> -> vector<16x1xf32>
    %50 = vector.broadcast %49 : vector<16x1xf32> to vector<16x16xf32>
    %51 = arith.mulf %46, %50 : vector<16x16xf32>
    %cst_25 = arith.constant dense<0.000000e+00> : vector<16x32xf32>
    %52 = tpu.matmul %51, %37, %cst_25 {dimension_numbers = #tpu.dot_dimension_numbers<[1], [0], [0], [1], [0, 0, 1, 1], [], []>} : vector<16x16xf32>, vector<16x32xf32>, vector<16x32xf32> -> vector<16x32xf32>
    %c0_26 = arith.constant 0 : index
    %c0_27 = arith.constant 0 : index
    %c0_28 = arith.constant 0 : index
    %53 = vector.load %arg8[%c0_26, %c0_27, %c0_28] : memref<1x32x32xf32, #tpu.memory_space<vmem>>, vector<1x32x32xf32>
    %54 = vector.shape_cast %53 : vector<1x32x32xf32> to vector<32x32xf32>
    %cst_29 = arith.constant dense<0.000000e+00> : vector<16x32xf32>
    %55 = tpu.matmul %52, %54, %cst_29 {dimension_numbers = #tpu.dot_dimension_numbers<[1], [0], [0], [1], [0, 0, 1, 1], [], []>} : vector<16x32xf32>, vector<32x32xf32>, vector<16x32xf32> -> vector<16x32xf32>
    %c0_30 = arith.constant 0 : index
    %c0_31 = arith.constant 0 : index
    %c0_32 = arith.constant 0 : index
    %56 = vector.load %arg9[%c0_30, %c0_31, %c0_32] : memref<1x1x32xf32, #tpu.memory_space<vmem>>, vector<1x1x32xf32>
    %57 = vector.shape_cast %56 : vector<1x1x32xf32> to vector<1x32xf32>
    %58 = vector.broadcast %57 : vector<1x32xf32> to vector<16x32xf32>
    %59 = arith.addf %55, %58 : vector<16x32xf32>
    %60 = arith.addf %27, %59 : vector<16x32xf32>
    %c0_33 = arith.constant 0 : index
    %c0_34 = arith.constant 0 : index
    %c0_35 = arith.constant 0 : index
    %61 = vector.load %arg10[%c0_33, %c0_34, %c0_35] : memref<1x1x32xf32, #tpu.memory_space<vmem>>, vector<1x1x32xf32>
    %62 = vector.shape_cast %61 : vector<1x1x32xf32> to vector<1x32xf32>
    %c0_36 = arith.constant 0 : index
    %c0_37 = arith.constant 0 : index
    %c0_38 = arith.constant 0 : index
    %63 = vector.load %arg11[%c0_36, %c0_37, %c0_38] : memref<1x1x32xf32, #tpu.memory_space<vmem>>, vector<1x1x32xf32>
    %64 = vector.shape_cast %63 : vector<1x1x32xf32> to vector<1x32xf32>
    %cst_39 = arith.constant dense<0.000000e+00> : vector<16xf32>
    %65 = vector.multi_reduction <add>, %60, %cst_39 [1] : vector<16x32xf32> to vector<16xf32>
    %66 = vector.shape_cast %65 : vector<16xf32> to vector<16x1xf32>
    %cst_40 = arith.constant 3.200000e+01 : f32
    %67 = vector.broadcast %cst_40 : f32 to vector<16x1xf32>
    %68 = arith.divf %66, %67 : vector<16x1xf32>
    %69 = vector.broadcast %68 : vector<16x1xf32> to vector<16x32xf32>
    %70 = arith.subf %60, %69 : vector<16x32xf32>
    %71 = arith.mulf %70, %70 : vector<16x32xf32>
    %cst_41 = arith.constant dense<0.000000e+00> : vector<16xf32>
    %72 = vector.multi_reduction <add>, %71, %cst_41 [1] : vector<16x32xf32> to vector<16xf32>
    %73 = vector.shape_cast %72 : vector<16xf32> to vector<16x1xf32>
    %cst_42 = arith.constant 3.200000e+01 : f32
    %74 = vector.broadcast %cst_42 : f32 to vector<16x1xf32>
    %75 = arith.divf %73, %74 : vector<16x1xf32>
    %76 = vector.broadcast %68 : vector<16x1xf32> to vector<16x32xf32>
    %77 = arith.subf %60, %76 : vector<16x32xf32>
    %cst_43 = arith.constant 9.99999996E-13 : f32
    %78 = vector.broadcast %cst_43 : f32 to vector<16x1xf32>
    %79 = arith.addf %75, %78 : vector<16x1xf32>
    %80 = math.rsqrt %79 : vector<16x1xf32>
    %81 = vector.broadcast %80 : vector<16x1xf32> to vector<16x32xf32>
    %82 = arith.mulf %77, %81 : vector<16x32xf32>
    %83 = vector.broadcast %62 : vector<1x32xf32> to vector<16x32xf32>
    %84 = arith.mulf %82, %83 : vector<16x32xf32>
    %85 = vector.broadcast %64 : vector<1x32xf32> to vector<16x32xf32>
    %86 = arith.addf %84, %85 : vector<16x32xf32>
    %c0_44 = arith.constant 0 : index
    %c0_45 = arith.constant 0 : index
    %c0_46 = arith.constant 0 : index
    %87 = vector.load %arg12[%c0_44, %c0_45, %c0_46] : memref<1x32x64xf32, #tpu.memory_space<vmem>>, vector<1x32x64xf32>
    %88 = vector.shape_cast %87 : vector<1x32x64xf32> to vector<32x64xf32>
    %cst_47 = arith.constant dense<0.000000e+00> : vector<16x64xf32>
    %89 = tpu.matmul %86, %88, %cst_47 {dimension_numbers = #tpu.dot_dimension_numbers<[1], [0], [0], [1], [0, 0, 1, 1], [], []>} : vector<16x32xf32>, vector<32x64xf32>, vector<16x64xf32> -> vector<16x64xf32>
    %c0_48 = arith.constant 0 : index
    %c0_49 = arith.constant 0 : index
    %c0_50 = arith.constant 0 : index
    %90 = vector.load %arg13[%c0_48, %c0_49, %c0_50] : memref<1x1x64xf32, #tpu.memory_space<vmem>>, vector<1x1x64xf32>
    %91 = vector.shape_cast %90 : vector<1x1x64xf32> to vector<1x64xf32>
    %92 = vector.broadcast %91 : vector<1x64xf32> to vector<16x64xf32>
    %93 = arith.addf %89, %92 : vector<16x64xf32>
    %94 = arith.mulf %93, %93 : vector<16x64xf32>
    %95 = arith.mulf %93, %94 : vector<16x64xf32>
    %cst_51 = arith.constant 4.471500e-02 : f32
    %96 = vector.broadcast %cst_51 : f32 to vector<16x64xf32>
    %97 = arith.mulf %96, %95 : vector<16x64xf32>
    %98 = arith.addf %93, %97 : vector<16x64xf32>
    %cst_52 = arith.constant 0.797884583 : f32
    %99 = vector.broadcast %cst_52 : f32 to vector<16x64xf32>
    %100 = arith.mulf %99, %98 : vector<16x64xf32>
    %101 = math.tanh %100 : vector<16x64xf32>
    %cst_53 = arith.constant 1.000000e+00 : f32
    %102 = vector.broadcast %cst_53 : f32 to vector<16x64xf32>
    %103 = arith.addf %102, %101 : vector<16x64xf32>
    %cst_54 = arith.constant 5.000000e-01 : f32
    %104 = vector.broadcast %cst_54 : f32 to vector<16x64xf32>
    %105 = arith.mulf %104, %103 : vector<16x64xf32>
    %106 = arith.mulf %93, %105 : vector<16x64xf32>
    %c0_55 = arith.constant 0 : index
    %c0_56 = arith.constant 0 : index
    %c0_57 = arith.constant 0 : index
    %107 = vector.load %arg14[%c0_55, %c0_56, %c0_57] : memref<1x64x32xf32, #tpu.memory_space<vmem>>, vector<1x64x32xf32>
    %108 = vector.shape_cast %107 : vector<1x64x32xf32> to vector<64x32xf32>
    %cst_58 = arith.constant dense<0.000000e+00> : vector<16x32xf32>
    %109 = tpu.matmul %106, %108, %cst_58 {dimension_numbers = #tpu.dot_dimension_numbers<[1], [0], [0], [1], [0, 0, 1, 1], [], []>} : vector<16x64xf32>, vector<64x32xf32>, vector<16x32xf32> -> vector<16x32xf32>
    %c0_59 = arith.constant 0 : index
    %c0_60 = arith.constant 0 : index
    %c0_61 = arith.constant 0 : index
    %110 = vector.load %arg15[%c0_59, %c0_60, %c0_61] : memref<1x1x32xf32, #tpu.memory_space<vmem>>, vector<1x1x32xf32>
    %111 = vector.shape_cast %110 : vector<1x1x32xf32> to vector<1x32xf32>
    %112 = vector.broadcast %111 : vector<1x32xf32> to vector<16x32xf32>
    %113 = arith.addf %109, %112 : vector<16x32xf32>
    %114 = arith.addf %86, %113 : vector<16x32xf32>
    %c0_62 = arith.constant 0 : index
    %c0_63 = arith.constant 0 : index
    %c0_64 = arith.constant 0 : index
    %115 = vector.load %arg16[%c0_62, %c0_63, %c0_64] : memref<1x1x32xf32, #tpu.memory_space<vmem>>, vector<1x1x32xf32>
    %116 = vector.shape_cast %115 : vector<1x1x32xf32> to vector<1x32xf32>
    %c0_65 = arith.constant 0 : index
    %c0_66 = arith.constant 0 : index
    %c0_67 = arith.constant 0 : index
    %117 = vector.load %arg17[%c0_65, %c0_66, %c0_67] : memref<1x1x32xf32, #tpu.memory_space<vmem>>, vector<1x1x32xf32>
    %118 = vector.shape_cast %117 : vector<1x1x32xf32> to vector<1x32xf32>
    %cst_68 = arith.constant dense<0.000000e+00> : vector<16xf32>
    %119 = vector.multi_reduction <add>, %114, %cst_68 [1] : vector<16x32xf32> to vector<16xf32>
    %120 = vector.shape_cast %119 : vector<16xf32> to vector<16x1xf32>
    %cst_69 = arith.constant 3.200000e+01 : f32
    %121 = vector.broadcast %cst_69 : f32 to vector<16x1xf32>
    %122 = arith.divf %120, %121 : vector<16x1xf32>
    %123 = vector.broadcast %122 : vector<16x1xf32> to vector<16x32xf32>
    %124 = arith.subf %114, %123 : vector<16x32xf32>
    %125 = arith.mulf %124, %124 : vector<16x32xf32>
    %cst_70 = arith.constant dense<0.000000e+00> : vector<16xf32>
    %126 = vector.multi_reduction <add>, %125, %cst_70 [1] : vector<16x32xf32> to vector<16xf32>
    %127 = vector.shape_cast %126 : vector<16xf32> to vector<16x1xf32>
    %cst_71 = arith.constant 3.200000e+01 : f32
    %128 = vector.broadcast %cst_71 : f32 to vector<16x1xf32>
    %129 = arith.divf %127, %128 : vector<16x1xf32>
    %130 = vector.broadcast %122 : vector<16x1xf32> to vector<16x32xf32>
    %131 = arith.subf %114, %130 : vector<16x32xf32>
    %cst_72 = arith.constant 9.99999996E-13 : f32
    %132 = vector.broadcast %cst_72 : f32 to vector<16x1xf32>
    %133 = arith.addf %129, %132 : vector<16x1xf32>
    %134 = math.rsqrt %133 : vector<16x1xf32>
    %135 = vector.broadcast %134 : vector<16x1xf32> to vector<16x32xf32>
    %136 = arith.mulf %131, %135 : vector<16x32xf32>
    %137 = vector.broadcast %116 : vector<1x32xf32> to vector<16x32xf32>
    %138 = arith.mulf %136, %137 : vector<16x32xf32>
    %139 = vector.broadcast %118 : vector<1x32xf32> to vector<16x32xf32>
    %140 = arith.addf %138, %139 : vector<16x32xf32>
    %c0_73 = arith.constant 0 : index
    %c0_74 = arith.constant 0 : index
    %c0_75 = arith.constant 0 : index
    %141 = vector.load %arg3[%c0_73, %c0_74, %c0_75] : memref<1x2x16xf32, #tpu.memory_space<vmem>>, vector<1x2x16xf32>
    %142 = vector.shape_cast %141 : vector<1x2x16xf32> to vector<2x16xf32>
    %cst_76 = arith.constant dense<0.000000e+00> : vector<2x32xf32>
    %143 = tpu.matmul %142, %140, %cst_76 {dimension_numbers = #tpu.dot_dimension_numbers<[1], [0], [0], [1], [0, 0, 1, 1], [], []>} : vector<2x16xf32>, vector<16x32xf32>, vector<2x32xf32> -> vector<2x32xf32>
    %144 = arith.mulf %143, %143 : vector<2x32xf32>
    %cst_77 = arith.constant dense<0.000000e+00> : vector<2xf32>
    %145 = vector.multi_reduction <add>, %144, %cst_77 [1] : vector<2x32xf32> to vector<2xf32>
    %146 = vector.shape_cast %145 : vector<2xf32> to vector<2x1xf32>
    %cst_78 = arith.constant 1.000000e-24 : f32
    %147 = vector.broadcast %cst_78 : f32 to vector<2x1xf32>
    %148 = arith.maximumf %146, %147 : vector<2x1xf32>
    %149 = math.rsqrt %148 : vector<2x1xf32>
    %150 = vector.broadcast %149 : vector<2x1xf32> to vector<2x32xf32>
    %151 = arith.mulf %143, %150 : vector<2x32xf32>
    %c0_79 = arith.constant 0 : index
    %c0_80 = arith.constant 0 : index
    %c0_81 = arith.constant 0 : index
    %152 = vector.load %arg18[%c0_79, %c0_80, %c0_81] : memref<1x2x32xf32, #tpu.memory_space<vmem>>, vector<1x2x32xf32>
    %153 = vector.shape_cast %152 : vector<1x2x32xf32> to vector<2x32xf32>
    %154 = vector.shape_cast %151 : vector<2x32xf32> to vector<1x2x32xf32>
    tpu.vector_store %arg18[%c0_79, %c0_80, %c0_81], %154 {strides = array<i32>} : memref<1x2x32xf32, #tpu.memory_space<vmem>>, vector<1x2x32xf32>,
    return
  }
  func.func @transform_0(%arg0: i32) -> (i32, i32, i32) {
    %c0_i32 = arith.constant 0 : i32
    %c0_i32_0 = arith.constant 0 : i32
    %c0_i32_1 = arith.constant 0 : i32
    return %arg0, %c0_i32, %c0_i32_0 : i32, i32, i32
  }
  func.func @transform_1(%arg0: i32) -> (i32, i32, i32) {
    %c0_i32 = arith.constant 0 : i32
    %c0_i32_0 = arith.constant 0 : i32
    %c0_i32_1 = arith.constant 0 : i32
    return %arg0, %c0_i32, %c0_i32_0 : i32, i32, i32
  }
  func.func @transform_2(%arg0: i32) -> (i32, i32, i32) {
    %c0_i32 = arith.constant 0 : i32
    %c0_i32_0 = arith.constant 0 : i32
    %c0_i32_1 = arith.constant 0 : i32
    return %arg0, %c0_i32, %c0_i32_0 : i32, i32, i32
  }
  func.func @transform_3(%arg0: i32) -> (i32, i32, i32) {
    %c0_i32 = arith.constant 0 : i32
    %c0_i32_0 = arith.constant 0 : i32
    %c0_i32_1 = arith.constant 0 : i32
    return %arg0, %c0_i32, %c0_i32_0 : i32, i32, i32
  }
  func.func @transform_4(%arg0: i32) -> (i32, i32, i32) {
    %c0_i32 = arith.constant 0 : i32
    %c0_i32_0 = arith.constant 0 : i32
    %c0_i32_1 = arith.constant 0 : i32
    return %arg0, %c0_i32, %c0_i32_0 : i32, i32, i32
  }
  func.func @transform_5(%arg0: i32) -> (i32, i32, i32) {
    %c0_i32 = arith.constant 0 : i32
    %c0_i32_0 = arith.constant 0 : i32
    %c0_i32_1 = arith.constant 0 : i32
    return %arg0, %c0_i32, %c0_i32_0 : i32, i32, i32
  }
  func.func @transform_6(%arg0: i32) -> (i32, i32, i32) {
    %c0_i32 = arith.constant 0 : i32
    %c0_i32_0 = arith.constant 0 : i32
    %c0_i32_1 = arith.constant 0 : i32
    return %arg0, %c0_i32, %c0_i32_0 : i32, i32, i32
  }
  func.func @transform_7(%arg0: i32) -> (i32, i32, i32) {
    %c0_i32 = arith.constant 0 : i32
    %c0_i32_0 = arith.constant 0 : i32
    %c0_i32_1 = arith.constant 0 : i32
    return %arg0, %c0_i32, %c0_i32_0 : i32, i32, i32
  }
  func.func @transform_8(%arg0: i32) -> (i32, i32, i32) {
    %c0_i32 = arith.constant 0 : i32
    %c0_i32_0 = arith.constant 0 : i32
    %c0_i32_1 = arith.constant 0 : i32
    return %arg0, %c0_i32, %c0_i32_0 : i32, i32, i32
  }
  func.func @transform_9(%arg0: i32) -> (i32, i32, i32) {
    %c0_i32 = arith.constant 0 : i32
    %c0_i32_0 = arith.constant 0 : i32
    %c0_i32_1 = arith.constant 0 : i32
    return %arg0, %c0_i32, %c0_i32_0 : i32, i32, i32
  }
  func.func @transform_10(%arg0: i32) -> (i32, i32, i32) {
    %c0_i32 = arith.constant 0 : i32
    %c0_i32_0 = arith.constant 0 : i32
    %c0_i32_1 = arith.constant 0 : i32
    return %arg0, %c0_i32, %c0_i32_0 : i32, i32, i32
  }
  func.func @transform_11(%arg0: i32) -> (i32, i32, i32) {
    %c0_i32 = arith.constant 0 : i32
    %c0_i32_0 = arith.constant 0 : i32
    %c0_i32_1 = arith.constant 0 : i32
    return %arg0, %c0_i32, %c0_i32_0 : i32, i32, i32
  }
  func.func @transform_12(%arg0: i32) -> (i32, i32, i32) {
    %c0_i32 = arith.constant 0 : i32
    %c0_i32_0 = arith.constant 0 : i32
    %c0_i32_1 = arith.constant 0 : i32
    return %arg0, %c0_i32, %c0_i32_0 : i32, i32, i32
  }
  func.func @transform_13(%arg0: i32) -> (i32, i32, i32) {
    %c0_i32 = arith.constant 0 : i32
    %c0_i32_0 = arith.constant 0 : i32
    %c0_i32_1 = arith.constant 0 : i32
    return %arg0, %c0_i32, %c0_i32_0 : i32, i32, i32
  }
  func.func @transform_14(%arg0: i32) -> (i32, i32, i32) {
    %c0_i32 = arith.constant 0 : i32
    %c0_i32_0 = arith.constant 0 : i32
    %c0_i32_1 = arith.constant 0 : i32
    return %arg0, %c0_i32, %c0_i32_0 : i32, i32, i32
  }
  func.func @transform_15(%arg0: i32) -> (i32, i32, i32) {
    %c0_i32 = arith.constant 0 : i32
    %c0_i32_0 = arith.constant 0 : i32
    %c0_i32_1 = arith.constant 0 : i32
    return %arg0, %c0_i32, %c0_i32_0 : i32, i32, i32
  }
  func.func @transform_16(%arg0: i32) -> (i32, i32, i32) {
    %c0_i32 = arith.constant 0 : i32
    %c0_i32_0 = arith.constant 0 : i32
    %c0_i32_1 = arith.constant 0 : i32
    return %arg0, %c0_i32, %c0_i32_0 : i32, i32, i32
  }
  func.func @transform_17(%arg0: i32) -> (i32, i32, i32) {
    %c0_i32 = arith.constant 0 : i32
    %c0_i32_0 = arith.constant 0 : i32
    %c0_i32_1 = arith.constant 0 : i32
    return %arg0, %c0_i32, %c0_i32_0 : i32, i32, i32
  }
}

</mosaic_0001>

<bundles_post_ra>
// kernel: tpu_custom_call.1
= control target key start
LH: loop header
LB: loop body
LE: loop exit
PB: predicated region body
PF: predicated region fallthrough
CT: control target
= control target key end

     0   :  { %s2790_s0 = inlined_call_operand.hbm [shape: f32[2,16,32], index: 0, kind: input, shape index: {}]   ;;  %s2791_s1 = inlined_call_operand.hbm [shape: f32[2,16,16], index: 1, kind: input, shape index: {}]   ;;  %s2792_s2 = inlined_call_operand.hbm [shape: f32[2,2,16], index: 2, kind: input, shape index: {}]   ;;  %s2793_s3 = inlined_call_operand.vmem [shape: f32[2,1,32], index: 3, kind: input, shape index: {}]   ;;  %s2794_s4 = inlined_call_operand.vmem [shape: f32[2,1,32], index: 4, kind: input, shape index: {}]   ;;  %s2795_s5 = inlined_call_operand.vmem [shape: f32[2,32,96], index: 5, kind: input, shape index: {}]   ;;  %s2796_s6 = inlined_call_operand.vmem [shape: f32[2,1,96], index: 6, kind: input, shape index: {}]   ;;  %s2797_s7 = inlined_call_operand.vmem [shape: f32[2,32,32], index: 7, kind: input, shape index: {}]   ;;  %s2798_s8 = inlined_call_operand.vmem [shape: f32[2,1,32], index: 8, kind: input, shape index: {}]   ;;  %s2799_s9 = inlined_call_operand.vmem [shape: f32[2,1,32], index: 9, kind: input, shape index: {}]   ;;  %s2800_s10 = inlined_call_operand.vmem [shape: f32[2,1,32], index: 10, kind: input, shape index: {}]   ;;  %s2801_s11 = inlined_call_operand.vmem [shape: f32[2,32,64], index: 11, kind: input, shape index: {}]   ;;  %s2802_s12 = inlined_call_operand.vmem [shape: f32[2,1,64], index: 12, kind: input, shape index: {}]   ;;  %s2803_s13 = inlined_call_operand.vmem [shape: f32[2,64,32], index: 13, kind: input, shape index: {}]   ;;  %s2804_s14 = inlined_call_operand.vmem [shape: f32[2,1,32], index: 14, kind: input, shape index: {}]   ;;  %s2805_s15 = inlined_call_operand.vmem [shape: f32[2,1,32], index: 15, kind: input, shape index: {}]   ;;  %s2806_s16 = inlined_call_operand.vmem [shape: f32[2,1,32], index: 16, kind: input, shape index: {}]   ;;  %s2807_s17 = inlined_call_operand.hbm [shape: f32[2,2,32], index: 17, kind: output, shape index: {}]  }
   0x1   :  { %2826 = sst [smem:[#allocation18_spill]] %s2790_s0 }
   0x2   :  { %2827 = sst [smem:[#allocation19_spill]] %s2791_s1 }
   0x3   :  { %2828 = sst [smem:[#allocation20_spill]] %s2797_s7 }
   0x4   :  { %2829 = sst [smem:[#allocation21_spill]] %s2798_s8 }
   0x5   :  { %2830 = sst [smem:[#allocation22_spill]] %s2799_s9 }
   0x6   :  { %2831 = sst [smem:[#allocation23_spill]] %s2800_s10 }
   0x7   :  { %2832 = sst [smem:[#allocation24_spill]] %s2801_s11 }
   0x8   :  { %2833 = sst [smem:[#allocation25_spill]] %s2802_s12 }
   0x9   :  { %2834 = sst [smem:[#allocation26_spill]] %s2803_s13 }
   0xa   :  { %2835 = sst [smem:[#allocation27_spill]] %s2804_s14 }
   0xb   :  { %2836 = sst [smem:[#allocation28_spill]] %s2805_s15 }
   0xc   :  { %2837 = sst [smem:[#allocation29_spill]] %s2806_s16 }
   0xd   :  { %2838 = sst [smem:[#allocation30_spill]] %s2807_s17 }
   0xe   :  { %22 = vsyncpa [#allocation3], 0 }
   0xf   :  { %24 = vsyncpa [#allocation3 + $0x1], 0 }
  0x10   :  { %25 = vsyncpa [#allocation6], 0 }
  0x11   :  { %27 = vsyncpa [#allocation6 + $0x1], 0 }
  0x12   :  { %28 = vsyncpa [#allocation4], 0 }
  0x13   :  { %30 = vsyncpa [#allocation4 + $0x1], 0  ;;  %s2454_s24 = smov 0   ;;  %s2456_s25 = smov 0  }
  0x14   :  { %s2458_s26 = smov 0   ;;  %s2460_s27 = smov 0  }
  0x15 LB: > { %2839 = sst [smem:[#allocation12_spill]] %s2340_s24  ;;  %s2475_s28 = sadd.s32 4294967295, %s2352_s27   ;;  %s2352_s27 = sphi %s2460_s27, %s2878_s27   ;;  %s2348_s26 = sphi %s2458_s26, %s2880_s26   ;;  %s2344_s25 = sphi %s2456_s25, %s2882_s25   ;;  %s2340_s24 = sphi %s2454_s24, %s2881_s24  }
  0x16   : > { %2840 = sst [smem:[#allocation13_spill]] %s2348_s26  ;;  %s1941_s29 = sadd.s32 4294967294, %s2352_s27  }
  0x17   : > { %s2479_s0 = sadd.s32 1, %s2352_s27   ;;  %s43_s30 = sadd.s32 1, %s2348_s26 }
  0x18   : > { %2841 = sst [smem:[#allocation14_spill]] %s2479_s0  ;;  %s40_s18 = ssub.s32 %s2352_s27, %s2479_s0 }
  0x19   : > { %p50_p0 = scmp.ne.s32.totalorder %s2348_s26, %s2344_s25  ;;  %p41_p1 = scmp.eq.s32.totalorder %s40_s18, 0 }
  0x1a   : > { %p51_p2 = scmp.eq.s32.totalorder %s2352_s27, 0  ;;  %p56_p3 = scmp.ne.s32.totalorder %s2344_s25, %s2340_s24 }
  0x1b   : > { %p57_p4 = scmp.eq.s32.totalorder %s2475_s28, 0  ;;  %p496_p7 = scmp.eq.s32.totalorder %s2475_s28, 1 }
  0x1c   : > { %s2491_s19 = scalar_select %p41_p1, %s2348_s26, %s43_s30  }
  0x1d   : > { %p52_p5 = por %p51_p2, %p50_p0  ;;  %p2493_p6 = por %p57_p4, %p56_p3 }
  0x1e   : > { %2842 = sst [smem:[#allocation15_spill]] %s2491_s19  ;;  %p502_p8 = scmp.eq.s32.totalorder %s1941_s29, 1 }
  0x1f   : > { %s2843_s1 = scalar_select %p2493_p6, 1, 0 }
  0x20   : > { %p2134_p10 = scmp.lt.s32.totalorder %s2352_s27, 2  ;;  %p2500_p11 = por %p496_p7, %p50_p0 }
  0x21   : > { %p2504_p12 = por %p502_p8, %p56_p3  ;;  %s2509_s22 = sand.u32 1, %s2348_s26  }
  0x22   : > { %s2844_s20 = scalar_select %p2500_p11, 1, 0 }
  0x23   : > { %s2846_s21 = scalar_select %p2504_p12, 1, 0 }
  0x24   : > { %2845 = sst [smem:[#allocation16_spill]] %s2844_s20  ;;  %s2819_s23 = sshll.u32 %s2352_s27, 8 }
  0x25   : > { %2847 = sst [smem:[#allocation17_spill]] %s2846_s21  ;;  %s2818_s30 = sshll.u32 %s2509_s22, 4 }
  0x26   : > { %p2513_p13 = pnand %p2134_p10, %p52_p5  ;;  %s543_s29 = sand.u32 1, %s2352_s27  }
  0x27   : > { %s2849_s24 = sld [smem:[#allocation19_spill]]  ;;  %s547_s26 = scalar_lea.vmem [#allocation5], %s2818_s30 }
  0x28   : > { %s554_s21 = sshll.u32 %s547_s26, 4  ;;  %s2530_s16 = scalar_lea.sflag [#allocation6], %s543_s29  ;;  %s2527_s21 = int_to_ptr.vmem [resolvable:$true] %s554_s21 }
  0x29   : > { %p2536_p2 = pneg %p2513_p13 }
  0x2d   : > { %s2850_s17 = smov %s2849_s24  ;;  %s2523_s20 = scalar_lea.hbm %s2849_s24, %s2819_s23 }
  0x2e   : > { %s2200_s15 = scalar_lea.hbm %s2523_s20, 256  ;;  %s2205_s26 = scalar_lea.hbm %s2850_s17, 512 }
  0x2f   : > { %p2201_p1 = scmp.ne.s32.totalorder %s2523_s20, %s2200_s15  ;;  %p2206_p5 = scmp.lt.s32.totalorder %s2523_s20, %s2850_s17 }
  0x30   : > { %p2207_p7 = scmp.lt.s32.totalorder %s2205_s26, %s2200_s15 }
  0x31   : > { %p2203_p3 = pnand %p2536_p2, %p2201_p1 }
  0x32   : > { %p2208_p8 = por %p2207_p7, %p2206_p5 }
  0x33   : > { %p2204_p4 = pneg %p2203_p3 }
  0x35   : > { %p2209_p10 = pnand %p2208_p8, %p2204_p4 }
  0x37   : > { %2212 = shalt.err (!%p2209_p10)
}
  0x38   : > { %s2213_s29 = scalar_lea.vmem %s2527_s21, 256  ;;  %s2354_s23 = smov [#allocation5]  }
  0x39   : > { %p2214_p9 = scmp.ne.s32.totalorder %s2527_s21, %s2213_s29  ;;  %s2218_s24 = sshll.u32 %s2354_s23, 4  ;;  %s2219_s24 = int_to_ptr.vmem [resolvable:$false] %s2218_s24 }
  0x3a   : > { %s2220_s0 = scalar_lea.vmem %s2219_s24, 512  ;;  %p2221_p0 = scmp.lt.s32.totalorder %s2527_s21, %s2219_s24 }
  0x3b   : > { %p2216_p1 = pnand %p2214_p9, %p2536_p2  ;;  %p2222_p12 = scmp.lt.s32.totalorder %s2220_s0, %s2213_s29 }
  0x3d   : > { %p2217_p3 = pneg %p2216_p1  ;;  %p2223_p11 = por %p2222_p12, %p2221_p0 }
  0x3f   : > { %p2224_p6 = pnand %p2223_p11, %p2217_p3 }
  0x41   : > { %2227 = shalt.err (!%p2224_p6)
}
  0x42   : > { %s2823_s15 = smov 128   ;;  %s2824_s23 = smov 8  }
  0x43   : > { %2126 = dma.hbm_to_vmem [thread:$0]  (!%p2513_p13), %s2523_s20, 256, %s2527_s21, %s2530_s16, %s2823_s15, %s2823_s15, %s2824_s23  }
  0x44   : > { %p672_p9 = scmp.lt.s32.totalorder %s2352_s27, 3  ;;  %s2852_s30 = sshll.u32 %s2352_s27, 8 }
  0x45   : > { %s2853_s29 = sld [smem:[#allocation18_spill]]  ;;  %p2854_p6 = scmp.ge.s32.totalorder %s2352_s27, 1 }
  0x46   : > { %s2856_s17 = sshll.u32 %s2509_s22, 4  ;;  %s1950_s20 = sshll.u32 %s2509_s22, 1 }
  0x47   : > { %p2572_p11 = pnand %p2854_p6, %p672_p9  ;;  %s526_s12 = scalar_lea.vmem [#allocation2], %s2856_s17 }
  0x48   : > { %s533_s13 = sshll.u32 %s526_s12, 4  ;;  %s523_s21 = scalar_lea.sflag [#allocation3], %s2509_s22  ;;  %s2578_s13 = int_to_ptr.vmem [resolvable:$true] %s533_s13 }
  0x49   : > { %s2855_s0 = scalar_select %p2572_p11, 1, 0 }
  0x4b   : > { %s2568_s24 = scalar_lea.hbm %s2853_s29, %s2852_s30  ;;  %s2233_s19 = scalar_lea.hbm %s2853_s29, 512 }
  0x4c   : > { %s2228_s15 = scalar_lea.hbm %s2568_s24, 256  ;;  %p2234_p5 = scmp.lt.s32.totalorder %s2568_s24, %s2853_s29 }
  0x4d   : > { %p2229_p12 = scmp.ne.s32.totalorder %s2568_s24, %s2228_s15  ;;  %p2235_p7 = scmp.lt.s32.totalorder %s2233_s19, %s2228_s15 }
  0x4f   : > { %p2231_p0 = pnand %p2229_p12, %p2536_p2  ;;  %p2236_p8 = por %p2235_p7, %p2234_p5 }
  0x51   : > { %p2232_p4 = pneg %p2231_p0 }
  0x53   : > { %p2237_p10 = pnand %p2236_p8, %p2232_p4 }
  0x55   : > { %2240 = shalt.err (!%p2237_p10)
}
  0x56   : > { %s2241_s12 = scalar_lea.vmem %s2578_s13, 256  ;;  %s2357_s17 = smov [#allocation2]  }
  0x57   : > { %p2242_p1 = scmp.ne.s32.totalorder %s2578_s13, %s2241_s12  ;;  %s2246_s30 = sshll.u32 %s2357_s17, 4  ;;  %s2247_s30 = int_to_ptr.vmem [resolvable:$false] %s2246_s30 }
  0x58   : > { %s2248_s26 = scalar_lea.vmem %s2247_s30, 512  ;;  %p2249_p6 = scmp.lt.s32.totalorder %s2578_s13, %s2247_s30 }
  0x59   : > { %p2244_p3 = pnand %p2242_p1, %p2536_p2  ;;  %p2250_p12 = scmp.lt.s32.totalorder %s2248_s26, %s2241_s12 }
  0x5b   : > { %p2245_p9 = pneg %p2244_p3  ;;  %p2251_p0 = por %p2250_p12, %p2249_p6 }
  0x5d   : > { %p2252_p11 = pnand %p2251_p0, %p2245_p9 }
  0x5f   : > { %2255 = shalt.err (!%p2252_p11)
}
  0x60   : > { %s2857_s10 = smov 8   ;;  %s2858_s15 = smov 128  }
  0x61   : > { %2123 = dma.hbm_to_vmem [thread:$0]  (!%p2513_p13), %s2568_s24, 256, %s2578_s13, %s523_s21, %s2858_s15, %s2858_s15, %s2857_s10  }
  0x62   : > { %s1951_s23 = sshll.u32 %s2352_s27, 5  ;;  %s568_s12 = scalar_lea.vmem [#allocation7], %s1950_s20 }
  0x63   : > { %s573_s30 = scalar_lea.hbm %s2792_s2, %s1951_s23  ;;  %s575_s26 = sshll.u32 %s568_s12, 4  ;;  %s576_s26 = int_to_ptr.vmem [resolvable:$true] %s575_s26 }
  0x64   : > { %s2256_s29 = scalar_lea.hbm %s573_s30, 32  ;;  %s2261_s8 = scalar_lea.hbm %s2792_s2, 64 }
  0x65   : > { %p2257_p11 = scmp.ne.s32.totalorder %s573_s30, %s2256_s29  ;;  %p2262_p7 = scmp.lt.s32.totalorder %s573_s30, %s2792_s2 }
  0x66   : > { %p2263_p8 = scmp.lt.s32.totalorder %s2261_s8, %s2256_s29 }
  0x67   : > { %p2259_p4 = pnand %p2257_p11, %p2536_p2 }
  0x68   : > { %p2264_p10 = por %p2263_p8, %p2262_p7 }
  0x69   : > { %p2260_p5 = pneg %p2259_p4 }
  0x6b   : > { %p2265_p1 = pnand %p2264_p10, %p2260_p5 }
  0x6d   : > { %2268 = shalt.err (!%p2265_p1)
}
  0x6e   : > { %s2269_s22 = scalar_lea.vmem %s576_s26, 32  ;;  %s2358_s24 = smov [#allocation7]  }
  0x6f   : > { %p2270_p3 = scmp.ne.s32.totalorder %s576_s26, %s2269_s22  ;;  %s2274_s20 = sshll.u32 %s2358_s24, 4  ;;  %s2275_s20 = int_to_ptr.vmem [resolvable:$false] %s2274_s20 }
  0x70   : > { %s2276_s21 = scalar_lea.vmem %s2275_s20, 64  ;;  %p2277_p12 = scmp.lt.s32.totalorder %s576_s26, %s2275_s20 }
  0x71   : > { %p2272_p9 = pnand %p2270_p3, %p2536_p2  ;;  %p2278_p0 = scmp.lt.s32.totalorder %s2276_s21, %s2269_s22 }
  0x73   : > { %p2273_p6 = pneg %p2272_p9  ;;  %p2279_p11 = por %p2278_p0, %p2277_p12 }
  0x75   : > { %p2280_p4 = pnand %p2279_p11, %p2273_p6 }
  0x77   : > { %2283 = shalt.err (!%p2280_p4)
}
  0x78   : > { %2129 = dma.hbm_to_vmem [thread:$0]  (!%p2513_p13), %s573_s30, 32, %s576_s26, %s2530_s16  }
  0x79   : > { %p2859_p5 = scmp.ne.s32.totalorder %s2855_s0, 0 }
  0x7a   : > { %s2627_s7 = sand.u32 (!%p2859_p5), 1, %s2344_s25   ;;  %p2860_p2 = scmp.ne.s32.totalorder (!%p2859_p5), %s2843_s1, 0 }
  0x7b   : > { %676 = sbr.rel (%p2859_p5) target bundleno = 3078 (0xc06), region = 88  ;;  %s1953_s8 = sshll.u32 (!%p2859_p5), %s2627_s7, 4 }
  0x7c   : > { %s679_s9 = scalar_lea.sflag (!%p2859_p5), [#allocation3], %s2627_s7  ;;  %s682_s11 = scalar_lea.vmem (!%p2859_p5), [#allocation2], %s1953_s8 }
  0x80   : > { %2327 = dma.done.wait (%p2860_p2), %s679_s9, 256  }
  0x81   : > { %2329 = vsyncadd (%p2860_p2), %s679_s9, 4294967040  ;;  %s687_s14 = sand.u32 1, %s2475_s28   ;;  %s2636_s18 = scalar_lea.vmem [#allocation5], %s1953_s8 }
  0x82   : > { %s688_s16 = scalar_lea.sflag [#allocation6], %s687_s14 }
  0x83   : > { %2331 = dma.done.wait (%p2860_p2), %s688_s16, 288  }
  0x84   : > { %2333 = vsyncadd (%p2860_p2), %s688_s16, 4294967008  ;;  %vm865_vm0 = vcmask 261120   ;;  %v861_v0 = vld [vmem:[%s682_s11] sm:$0xff]  ;;  %v862_v1 = vld [vmem:[%s682_s11 + $0x8] sm:$0xff]  ;;  %p811_p13 = scmp.lt.s32.totalorder %s2475_s28, 1  ;;  %s2359_s20 = smov 96  }
  0x85   : > { %v866_v2 = vsel %vm865_vm0, %v861_v0, 0.0  ;;  %v869_v3 = vsel %vm865_vm0, %v862_v1, 0.0  ;;  %v1002_v41 = vld [vmem:[%s2636_s18 + $0x8] sm:$0xff]  ;;  %v1001_v43 = vld [vmem:[%s2636_s18] sm:$0xff]  ;;  %vm1092_vm1 = vcmask 130048   ;;  %s2360_s21 = smov 64  }
  0x86   : > { %867 = vadd.xlane.f32.xlu0 %v866_v2  ;;  %s2648_s1 = scalar_select %p811_p13, %s2475_s28, 1  ;;  %vm1465_vm2 = vcmask 523264   ;;  %vm2362_vm3 = vmmov 0   ;;  %vm1668_vm4 = vcmask 254976  }
  0x87   : > { %s2861_s11 = sld [smem:[#allocation20_spill]]  ;;  %s1991_s9 = sshll.u32 %s2475_s28, 5 }
  0x88   : > { %s2651_s29 = sshll.u32 %s2648_s1, 5  ;;  %s813_s17 = scalar_lea.vmem %s2793_s3, %s2648_s1 }
  0x89   : > { %s821_s15 = scalar_lea.vmem %s2795_s5, %s2651_s29  ;;  %s816_s26 = scalar_lea.vmem %s2794_s4, %s2648_s1  ;;  %v1965_v25 = vld [vmem:[%s813_s17] ss:$0 sm:$0xff] }
  0x8a   : > { %870 = vadd.xlane.f32.xlu0 %v869_v3  ;;  %v912_v14 = vld [vmem:[%s821_s15 + $0x18] sm:$0xff]  ;;  %v911_v15 = vld [vmem:[%s821_s15 + $0x10] sm:$0xff]  ;;  %v910_v16 = vld [vmem:[%s821_s15 + $0x8] sm:$0xff]  ;;  %s824_s24 = scalar_lea.vmem %s2796_s6, %s2648_s1  ;;  %s2862_s0 = sld [smem:[#allocation21_spill]] }
  0x8b   : > { %2039 = vmatprep.subr.mxu0 %v912_v14  ;;  %v909_v17 = vld [vmem:[%s821_s15] sm:$0xff]  ;;  %s2863_s19 = sld [smem:[#allocation24_spill]]  ;;  %s1677_s15 = scalar_lea.sflag [#allocation4], %s2627_s7 }
  0x8c   : > { %2040 = vmatpush3.msra.mxu0 %v912_v14  ;;  %v1966_v27 = vld [vmem:[%s816_s26] ss:$0 sm:$0xff]  ;;  %s2864_s12 = sld [smem:[#allocation22_spill]] }
  0x8d   : > { %2041 = vmatprep.subr.mxu0 %v911_v15  ;;  %v1967_v34 = vld [vmem:[%s824_s24] ss:$0 sm:$0xff]  ;;  %s829_s14 = scalar_lea.vmem %s2861_s11, %s2651_s29  ;;  %s2865_s24 = sld [smem:[#allocation23_spill]] }
  0x8e   : > { %2042 = vmatpush3.msra.mxu0 %v911_v15  ;;  %v1205_v59 = vld [vmem:[%s829_s14 + $0x18] sm:$0xff]  ;;  %v1204_v60 = vld [vmem:[%s829_s14 + $0x10] sm:$0xff]  ;;  %s2866_s11 = sld [smem:[#allocation26_spill]] }
  0x8f   : > { %2043 = vmatprep.subr.mxu0 %v910_v16 }
  0x90   : > { %2044 = vmatpush3.msra.mxu0 %v910_v16  ;;  %s832_s10 = scalar_lea.vmem %s2862_s0, %s2648_s1  ;;  %s2867_s0 = sld [smem:[#allocation25_spill]] }
  0x91   : > { %2045 = vmatprep.subr.mxu0 %v909_v17  ;;  %s843_s17 = scalar_lea.vmem %s2863_s19, %s2651_s29  ;;  %s2868_s19 = sld [smem:[#allocation27_spill]] }
  0x92   : > { %2046 = vmatpush3.msra.mxu0 %v909_v17  ;;  %s835_s26 = scalar_lea.vmem %s2864_s12, %s2648_s1  ;;  %s2869_s12 = sld [smem:[#allocation28_spill]] }
 0x10f   : > { %v868_v4 = vpop.xlane.xlu0 %867 }
 0x110   : > { %v873_v5 = vmul.f32 0.03125, %v868_v4 }
 0x112   : > { %v875_v6 = vsub.f32 %v861_v0, %v873_v5  ;;  %v1203_v5 = vld [vmem:[%s829_s14 + $0x8] sm:$0xff] }
 0x113   : > { %v871_v7 = vpop.xlane.xlu0 %870 }
 0x114   : > { %v874_v8 = vmul.f32 0.03125, %v871_v7  ;;  %v877_v9 = vmul.f32 %v875_v6, %v875_v6 }
 0x116   : > { %v876_v10 = vsub.f32 %v862_v1, %v874_v8  ;;  %v879_v11 = vsel %vm865_vm0, %v877_v9, 0.0  ;;  %v1976_v9 = vld [vmem:[%s832_s10] ss:$0 sm:$0xff]  ;;  %s846_s10 = scalar_lea.vmem %s2867_s0, %s2648_s1  ;;  %s2872_s0 = sld [smem:[#allocation30_spill]] }
 0x117   : > { %880 = vadd.xlane.f32.xlu1 %v879_v11 }
 0x118   : > { %v878_v12 = vmul.f32 %v876_v10, %v876_v10 }
 0x11a   : > { %v882_v13 = vsel %vm865_vm0, %v878_v12, 0.0 }
 0x11b   : > { %883 = vadd.xlane.f32.xlu1 %v882_v13 }
 0x1a0   : > { %v881_v18 = vpop.xlane.xlu1 %880 }
 0x1a1   : > { %v885_v19 = vmul.f32 0.03125, %v881_v18 }
 0x1a3   : > { %v887_v20 = vadd.f32 1e-12, %v885_v19 }
 0x1a4   : > { %v884_v21 = vpop.xlane.xlu1 %883 }
 0x1a5   : > { %2174 = vrsqrt.f32 %v887_v20  ;;  %v886_v22 = vmul.f32 0.03125, %v884_v21 }
 0x1a7   : > { %v888_v23 = vadd.f32 1e-12, %v886_v22 }
 0x1a9   : > { %2176 = vrsqrt.f32 %v888_v23 }
 0x1b2   : > { %v2175_v24 = vpop.eup %2174 }
 0x1b3   : > { %v891_v26 = vmul.f32 %v2175_v24, %v875_v6  ;;  %v1202_v6 = vld [vmem:[%s829_s14] sm:$0xff] }
 0x1b5   : > { %v899_v28 = vmul.f32 %v1965_v25, %v891_v26 }
 0x1b6   : > { %v2177_v29 = vpop.eup %2176 }
 0x1b7   : > { %v892_v30 = vmul.f32 %v2177_v29, %v876_v10  ;;  %v2665_v31 = vadd.f32 %v1966_v27, %v899_v28  ;;  %v1343_v28 = vld [vmem:[%s843_s17 + $0x18] sm:$0xff]  ;;  %v1342_v29 = vld [vmem:[%s843_s17 + $0x10] sm:$0xff] }
 0x1b9   : > { %v900_v32 = vmul.f32 %v1965_v25, %v892_v30  ;;  %2047 = vmatprep.mubr.msk.f32.mxu0 %vm865_vm0, %v2665_v31  ;;  %v1341_v30 = vld [vmem:[%s843_s17 + $0x8] sm:$0xff] }
 0x1bb   : > { %v2669_v33 = vadd.f32 %v1966_v27, %v900_v32 }
 0x1bd   : > { %2048 = vmatmul.mubr.msk.f32.vlgmr.msra.gmra.mxu0 %vm865_vm0, %v2669_v33 }
 0x27d   : > { %v2049_v35 = vpop.f32.mrf.mxu0 }
 0x27e   : > { %v998_v36 = vadd.f32 %v2049_v35, %v1967_v34 }
 0x27f   : > { %v992_v37 = vpop.f32.mrf.mxu0 }
 0x280   : > { %v993_v38 = vadd.f32 %v1967_v34, %v992_v37  ;;  %1007 = vrot.lane.b32.xlu0 %v998_v36, %s2359_s20 }
 0x282   : > { %1005 = vrot.lane.b32.xlu1 %v993_v38, %s2359_s20  ;;  %2054 = vmatprep.mubr.msk.f32.mxu1 %vm865_vm0, %v993_v38  ;;  %s838_s20 = scalar_lea.vmem %s2865_s24, %s2648_s1  ;;  %s2870_s24 = sld [smem:[#allocation29_spill]] }
 0x2f2   : > { %v1008_v39 = vpop.permute.xlu0 %1007 }
 0x2f3   : > { %2050 = vmatprep.subr.msk.mxu1 %vm865_vm0, %v1008_v39 }
 0x2f4   : > { %2051 = vmatpush3.xpose.msk.msra.mxu1 %vm865_vm0, %v1008_v39  ;;  %v1006_v40 = vpop.permute.xlu1 %1005  ;;  %v1979_v39 = vld [vmem:[%s835_s26] ss:$0 sm:$0xff]  ;;  %s857_s26 = scalar_lea.vmem %s2869_s12, %s2648_s1 }
 0x2f5   : > { %2052 = vmatprep.subr.msk.mxu1 %vm865_vm0, %v1006_v40 }
 0x2f8   : > { %2053 = vmatpush3.xpose.msk.msra.mxu1 %vm865_vm0, %v1006_v40 }
 0x2f9   : > { %2064 = vmatprep.subr.mxu1 %v1205_v59 }
 0x2fb   : > { %2055 = vmatmul.mubr.msk.f32.vlgmr.msra.gmra.mxu1 %vm865_vm0, %v998_v36 }
 0x2fc   : > { %2065 = vmatpush3.msra.mxu1 %v1205_v59 }
 0x2fd   : > { %2066 = vmatprep.subr.mxu1 %v1204_v60 }
 0x2fe   : > { %2067 = vmatpush3.msra.mxu1 %v1204_v60 }
 0x2ff   : > { %2068 = vmatprep.subr.mxu1 %v1203_v5 }
 0x300   : > { %2069 = vmatpush3.msra.mxu1 %v1203_v5 }
 0x301   : > { %2070 = vmatprep.subr.mxu1 %v1202_v6 }
 0x302   : > { %2071 = vmatpush3.msra.mxu1 %v1202_v6 }
 0x3bb   : > { %v2056_v42 = vpop.f32.mrf.mxu1 }
 0x3bc   : > { %v1089_v44 = vadd.f32 %v2056_v42, %v1002_v41 }
 0x3bd   : > { %v1083_v45 = vpop.f32.mrf.mxu1 }
 0x3be   : > { %v1084_v46 = vadd.f32 %v1083_v45, %v1001_v43  ;;  %v1096_v47 = vsel %vm1092_vm1, %v1089_v44, -inf }
 0x3bf   : > { %1097 = vmax.xlane.f32.xlu0 %v1096_v47 }
 0x3c0   : > { %v1093_v48 = vsel %vm1092_vm1, %v1084_v46, -inf }
 0x3c1   : > { %1094 = vmax.xlane.f32.xlu1 %v1093_v48 }
 0x448   : > { %v1098_v49 = vpop.xlane.xlu0 %1097 }
 0x449   : > { %v1100_v50 = vsub.f32 %v1089_v44, %v1098_v49  ;;  %v1980_v44 = vld [vmem:[%s838_s20] ss:$0 sm:$0xff]  ;;  %s860_s20 = scalar_lea.vmem %s2870_s24, %s2648_s1 }
 0x44a   : > { %v1095_v51 = vpop.xlane.xlu1 %1094 }
 0x44b   : > { %v1103_v52 = vmul.f32 1.442695, %v1100_v50  ;;  %v1099_v53 = vsub.f32 %v1084_v46, %v1095_v51 }
 0x44d   : > { %2178 = vpow2.f32 %v1103_v52  ;;  %v1101_v54 = vmul.f32 1.442695, %v1099_v53 }
 0x44f   : > { %2180 = vpow2.f32 %v1101_v54 }
 0x45a   : > { %v2179_v55 = vpop.eup %2178 }
 0x45b   : > { %v1108_v56 = vsel %vm1092_vm1, %v2179_v55, 0.0 }
 0x45c   : > { %v2181_v57 = vpop.eup %2180  ;;  %1109 = vadd.xlane.f32.xlu1 %v1108_v56  ;;  %v1981_v56 = vld [vmem:[%s846_s10] ss:$0 sm:$0xff]  ;;  %s1688_s10 = scalar_lea.hbm %s2872_s0, %s1991_s9 }
 0x45d   : > { %v1105_v58 = vsel %vm1092_vm1, %v2181_v57, 0.0 }
 0x45e   : > { %1106 = vadd.xlane.f32.xlu0 %v1105_v58 }
 0x46d   : > { %1115 = vrot.lane.b32.xlu1 %v993_v38, %s2360_s21 }
 0x474   : > { %1117 = vrot.lane.b32.xlu0 %v998_v36, %s2360_s21  ;;  %s1999_s21 = sshll.u32 %s2648_s1, 6 }
 0x475   : > { %s851_s14 = scalar_lea.vmem %s2866_s11, %s1999_s21  ;;  %s1955_s21 = sshll.u32 %s2627_s7, 1 }
 0x476   : > { %v1457_v48 = vld [vmem:[%s851_s14 + $0x38] sm:$0xff]  ;;  %v1456_v49 = vld [vmem:[%s851_s14 + $0x30] sm:$0xff]  ;;  %v1455_v50 = vld [vmem:[%s851_s14 + $0x28] sm:$0xff]  ;;  %s700_s8 = scalar_lea.vmem [#allocation7], %s1955_s21  ;;  %s810_s11 = scalar_lea.vmem [#allocation8], %s1955_s21 }
 0x477   : > { %2086 = vmatprep.subr.mxu1 %v1457_v48  ;;  %v1454_v51 = vld [vmem:[%s851_s14 + $0x20] sm:$0xff]  ;;  %v1453_v52 = vld [vmem:[%s851_s14 + $0x18] sm:$0xff]  ;;  %v1452_v53 = vld [vmem:[%s851_s14 + $0x10] sm:$0xff] }
 0x478   : > { %v1451_v54 = vld [vmem:[%s851_s14 + $0x8] sm:$0xff] }
 0x4e5   : > { %v1110_v61 = vpop.xlane.xlu1 %1109 }
 0x4e6   : > { %2182 = vrcp.f32 %v1110_v61 }
 0x4e7   : > { %v1107_v62 = vpop.xlane.xlu0 %1106 }
 0x4e8   : > { %2184 = vrcp.f32 %v1107_v62 }
 0x4e9   : > { %v1116_v0 = vpop.permute.xlu1 %1115 }
 0x4eb   : > { %v1118_v63 = vpop.permute.xlu0 %1117 }
 0x4ec   : > { %2057 = vmatprep.subr.mxu0 %v1118_v63 }
 0x4ed   : > { %2058 = vmatpush3.msra.mxu0 %v1118_v63 }
 0x4ee   : > { %2059 = vmatprep.subr.mxu0 %v1116_v0 }
 0x4ef   : > { %2060 = vmatpush3.msra.mxu0 %v1116_v0 }
 0x4f0   : > { %2075 = vmatprep.subr.mxu0 %v1343_v28 }
 0x4f3   : > { %v2183_v1 = vpop.eup %2182 }
 0x4f4   : > { %v1114_v4 = vmul.f32 %v2183_v1, %v2179_v55  ;;  %v1450_v55 = vld [vmem:[%s851_s14] sm:$0xff]  ;;  %s1690_s14 = sshll.u32 %s810_s11, 4  ;;  %s1691_s14 = int_to_ptr.vmem [resolvable:$true] %s1690_s14 }
 0x4f5   : > { %v2185_v2 = vpop.eup %2184  ;;  %s2284_s23 = scalar_lea.vmem %s1691_s14, 32 }
 0x4f6   : > { %v1113_v3 = vmul.f32 %v2185_v2, %v2181_v57  ;;  %p2285_p7 = scmp.ne.s32.totalorder %s1691_s14, %s2284_s23 }
 0x4f8   : > { %2061 = vmatprep.mubr.msk.f32.mxu0 %vm1092_vm1, %v1113_v3 }
 0x4f9   : > { %2062 = vmatmul.mubr.msk.f32.vlgmr.msra.gmra.mxu0 %vm1092_vm1, %v1114_v4 }
 0x4fa   : > { %2076 = vmatpush3.msra.mxu0 %v1343_v28 }
 0x4fb   : > { %2077 = vmatprep.subr.mxu0 %v1342_v29 }
 0x4fc   : > { %2078 = vmatpush3.msra.mxu0 %v1342_v29 }
 0x4fd   : > { %2079 = vmatprep.subr.mxu0 %v1341_v30 }
 0x4fe   : > { %2080 = vmatpush3.msra.mxu0 %v1341_v30 }
 0x5b9   : > { %v2063_v7 = vpop.f32.mrf.mxu0 }
 0x5bb   : > { %v1193_v8 = vpop.f32.mrf.mxu0 }
 0x5bc   : > { %2072 = vmatprep.mubr.msk.f32.mxu1 %vm865_vm0, %v1193_v8 }
 0x5bd   : > { %2073 = vmatmul.mubr.msk.f32.vlgmr.msra.gmra.mxu1 %vm865_vm0, %v2063_v7 }
 0x5be   : > { %2087 = vmatpush3.msra.mxu1 %v1457_v48 }
 0x5bf   : > { %2088 = vmatprep.subr.mxu1 %v1456_v49 }
 0x5c0   : > { %2089 = vmatpush3.msra.mxu1 %v1456_v49 }
 0x5c1   : > { %2090 = vmatprep.subr.mxu1 %v1455_v50 }
 0x5c2   : > { %2091 = vmatpush3.msra.mxu1 %v1455_v50 }
 0x5c3   : > { %2092 = vmatprep.subr.mxu1 %v1454_v51 }
 0x5c4   : > { %2093 = vmatpush3.msra.mxu1 %v1454_v51  ;;  %v1593_v51 = vld [vmem:[%s700_s8] sm:$0x3] }
 0x5c5   : > { %2094 = vmatprep.subr.mxu1 %v1453_v52 }
 0x5c6   : > { %2095 = vmatpush3.msra.mxu1 %v1453_v52 }
 0x5c7   : > { %2096 = vmatprep.subr.mxu1 %v1452_v53 }
 0x5c8   : > { %2097 = vmatpush3.msra.mxu1 %v1452_v53 }
 0x5c9   : > { %2098 = vmatprep.subr.mxu1 %v1451_v54 }
 0x5ca   : > { %2099 = vmatpush3.msra.mxu1 %v1451_v54 }
 0x5cb   : > { %2100 = vmatprep.subr.mxu1 %v1450_v55 }
 0x5cc   : > { %2101 = vmatpush3.msra.mxu1 %v1450_v55 }
 0x67d   : > { %v2074_v10 = vpop.f32.mrf.mxu1 }
 0x67e   : > { %v1291_v11 = vadd.f32 %v2074_v10, %v1976_v9 }
 0x67f   : > { %v1285_v12 = vpop.f32.mrf.mxu1 }
 0x680   : > { %v1286_v13 = vadd.f32 %v1976_v9, %v1285_v12  ;;  %v1295_v14 = vadd.f32 %v1291_v11, %v2669_v33 }
 0x682   : > { %v1301_v15 = vsel %vm865_vm0, %v1295_v14, 0.0  ;;  %v1294_v16 = vadd.f32 %v1286_v13, %v2665_v31  ;;  %v1340_v31 = vld [vmem:[%s843_s17] sm:$0xff]  ;;  %s854_s17 = scalar_lea.vmem %s2868_s19, %s2648_s1  ;;  %s2871_s1 = sld [smem:[#allocation16_spill]] }
 0x683   : > { %1302 = vadd.xlane.f32.xlu0 %v1301_v15  ;;  %2081 = vmatprep.subr.mxu0 %v1340_v31  ;;  %v1984_v15 = vld [vmem:[%s854_s17] ss:$0 sm:$0xff]  ;;  %s2363_s19 = smov [#allocation8]  }
 0x684   : > { %v1298_v17 = vsel %vm865_vm0, %v1294_v16, 0.0  ;;  %2082 = vmatpush3.msra.mxu0 %v1340_v31  ;;  %s2288_s17 = sshll.u32 %s2363_s19, 4  ;;  %s2289_s17 = int_to_ptr.vmem [resolvable:$false] %s2288_s17 }
 0x685   : > { %1299 = vadd.xlane.f32.xlu1 %v1298_v17  ;;  %s2290_s28 = scalar_lea.vmem %s2289_s17, 64  ;;  %p2291_p3 = scmp.lt.s32.totalorder %s1691_s14, %s2289_s17 }
 0x686   : > { %p2292_p9 = scmp.lt.s32.totalorder %s2290_s28, %s2284_s23 }
 0x688   : > { %p2873_p8 = scmp.ne.s32.totalorder %s2871_s1, 0  ;;  %p2293_p6 = por %p2292_p9, %p2291_p3 }
 0x68a   : > { %p2286_p10 = pnand %p2285_p7, %p2873_p8 }
 0x68c   : > { %p2287_p1 = pneg %p2286_p10 }
 0x68e   : > { %p2294_p12 = pnand %p2293_p6, %p2287_p1 }
 0x70c   : > { %v1303_v18 = vpop.xlane.xlu0 %1302 }
 0x70d   : > { %v1305_v19 = vmul.f32 0.03125, %v1303_v18 }
 0x70e   : > { %v1300_v20 = vpop.xlane.xlu1 %1299 }
 0x70f   : > { %v1307_v21 = vsub.f32 %v1295_v14, %v1305_v19  ;;  %v1304_v22 = vmul.f32 0.03125, %v1300_v20 }
 0x711   : > { %v1306_v23 = vsub.f32 %v1294_v16, %v1304_v22  ;;  %v1309_v24 = vmul.f32 %v1307_v21, %v1307_v21 }
 0x713   : > { %v1313_v25 = vsel %vm865_vm0, %v1309_v24, 0.0  ;;  %v1308_v26 = vmul.f32 %v1306_v23, %v1306_v23 }
 0x714   : > { %1314 = vadd.xlane.f32.xlu1 %v1313_v25 }
 0x715   : > { %v1310_v27 = vsel %vm865_vm0, %v1308_v26, 0.0 }
 0x716   : > { %1311 = vadd.xlane.f32.xlu0 %v1310_v27 }
 0x79d   : > { %v1315_v32 = vpop.xlane.xlu1 %1314 }
 0x79e   : > { %v1317_v33 = vmul.f32 0.03125, %v1315_v32 }
 0x79f   : > { %v1312_v34 = vpop.xlane.xlu0 %1311 }
 0x7a0   : > { %v1319_v35 = vadd.f32 1e-12, %v1317_v33  ;;  %v1316_v36 = vmul.f32 0.03125, %v1312_v34  ;;  %v2361_v34 = vmov 0.0  }
 0x7a1   : > { %2105 = vmatprep.subr.mxu0 %v2361_v34 }
 0x7a2   : > { %2186 = vrsqrt.f32 %v1319_v35  ;;  %v1318_v37 = vadd.f32 1e-12, %v1316_v36 }
 0x7a4   : > { %2188 = vrsqrt.f32 %v1318_v37 }
 0x7af   : > { %v2187_v38 = vpop.eup %2186 }
 0x7b0   : > { %v1323_v40 = vmul.f32 %v2187_v38, %v1307_v21 }
 0x7b1   : > { %v2189_v41 = vpop.eup %2188 }
 0x7b2   : > { %v1322_v42 = vmul.f32 %v2189_v41, %v1306_v23  ;;  %v1331_v43 = vmul.f32 %v1979_v39, %v1323_v40 }
 0x7b4   : > { %v1330_v45 = vmul.f32 %v1979_v39, %v1322_v42  ;;  %v2721_v47 = vadd.f32 %v1980_v44, %v1331_v43  ;;  %v1987_v42 = vld [vmem:[%s857_s26] ss:$0 sm:$0xff] }
 0x7b6   : > { %v2719_v46 = vadd.f32 %v1980_v44, %v1330_v45  ;;  %v1988_v45 = vld [vmem:[%s860_s20] ss:$0 sm:$0xff] }
 0x7b8   : > { %2083 = vmatprep.mubr.msk.f32.mxu0 %vm865_vm0, %v2719_v46 }
 0x7b9   : > { %2084 = vmatmul.mubr.msk.f32.vlgmr.msra.gmra.mxu0 %vm865_vm0, %v2721_v47 }
 0x7ba   : > { %2109 = vmatprep.mubr.msk.f32.mxu0 %vm2362_vm3, %v2361_v34 }
 0x879   : > { %v2085_v57 = vpop.f32.mrf.mxu0 }
 0x87a   : > { %v1429_v58 = vadd.f32 %v2085_v57, %v1981_v56 }
 0x87b   : > { %v1423_v59 = vpop.f32.mrf.mxu0 }
 0x87c   : > { %v1433_v60 = vmul.f32 %v1429_v58, %v1429_v58  ;;  %v1424_v61 = vadd.f32 %v1981_v56, %v1423_v59 }
 0x87e   : > { %v1435_v62 = vmul.f32 %v1433_v60, %v1429_v58  ;;  %v1432_v63 = vmul.f32 %v1424_v61, %v1424_v61 }
 0x880   : > { %v1437_v0 = vmul.f32 0.044715, %v1435_v62  ;;  %v1434_v1 = vmul.f32 %v1432_v63, %v1424_v61 }
 0x882   : > { %v1439_v2 = vadd.f32 %v1437_v0, %v1429_v58  ;;  %v1436_v3 = vmul.f32 0.044715, %v1434_v1 }
 0x884   : > { %v1441_v4 = vmul.f32 0.7978846, %v1439_v2  ;;  %v1438_v5 = vadd.f32 %v1436_v3, %v1424_v61 }
 0x886   : > { %2190 = vtanh.f32 %v1441_v4  ;;  %v1440_v6 = vmul.f32 0.7978846, %v1438_v5 }
 0x888   : > { %2192 = vtanh.f32 %v1440_v6 }
 0x893   : > { %v2191_v7 = vpop.eup %2190 }
 0x894   : > { %v1445_v8 = vadd.f32 1.0, %v2191_v7 }
 0x895   : > { %v2193_v9 = vpop.eup %2192 }
 0x896   : > { %v1444_v10 = vadd.f32 1.0, %v2193_v9  ;;  %v1447_v11 = vmul.f32 0.5, %v1445_v8 }
 0x898   : > { %v1446_v12 = vmul.f32 0.5, %v1444_v10  ;;  %v1449_v14 = vmul.f32 %v1447_v11, %v1429_v58 }
 0x89a   : > { %v1448_v13 = vmul.f32 %v1446_v12, %v1424_v61 }
 0x89c   : > { %2102 = vmatprep.mubr.msk.f32.mxu1 %vm1465_vm2, %v1448_v13 }
 0x89d   : > { %2103 = vmatmul.mubr.msk.f32.vlgmr.msra.gmra.mxu1 %vm1465_vm2, %v1449_v14 }
 0x95d   : > { %v2104_v16 = vpop.f32.mrf.mxu1 }
 0x95e   : > { %v1544_v17 = vadd.f32 %v2104_v16, %v1984_v15 }
 0x95f   : > { %v1538_v18 = vpop.f32.mrf.mxu1 }
 0x960   : > { %v1539_v19 = vadd.f32 %v1984_v15, %v1538_v18  ;;  %v1548_v20 = vadd.f32 %v1544_v17, %v2721_v47 }
 0x962   : > { %v1554_v21 = vsel %vm865_vm0, %v1548_v20, 0.0  ;;  %v1547_v22 = vadd.f32 %v1539_v19, %v2719_v46 }
 0x963   : > { %1555 = vadd.xlane.f32.xlu0 %v1554_v21 }
 0x964   : > { %v1551_v23 = vsel %vm865_vm0, %v1547_v22, 0.0 }
 0x965   : > { %1552 = vadd.xlane.f32.xlu1 %v1551_v23 }
 0x9ec   : > { %v1556_v24 = vpop.xlane.xlu0 %1555 }
 0x9ed   : > { %v1558_v25 = vmul.f32 0.03125, %v1556_v24 }
 0x9ee   : > { %v1553_v26 = vpop.xlane.xlu1 %1552 }
 0x9ef   : > { %v1560_v27 = vsub.f32 %v1548_v20, %v1558_v25  ;;  %v1557_v28 = vmul.f32 0.03125, %v1553_v26 }
 0x9f1   : > { %v1559_v29 = vsub.f32 %v1547_v22, %v1557_v28  ;;  %v1562_v30 = vmul.f32 %v1560_v27, %v1560_v27 }
 0x9f3   : > { %v1566_v31 = vsel %vm865_vm0, %v1562_v30, 0.0  ;;  %v1561_v32 = vmul.f32 %v1559_v29, %v1559_v29 }
 0x9f4   : > { %1567 = vadd.xlane.f32.xlu0 %v1566_v31 }
 0x9f5   : > { %v1563_v33 = vsel %vm865_vm0, %v1561_v32, 0.0 }
 0x9f6   : > { %1564 = vadd.xlane.f32.xlu1 %v1563_v33 }
 0xa7d   : > { %v1568_v35 = vpop.xlane.xlu0 %1567 }
 0xa7e   : > { %v1570_v36 = vmul.f32 0.03125, %v1568_v35 }
 0xa7f   : > { %v1565_v37 = vpop.xlane.xlu1 %1564 }
 0xa80   : > { %v1572_v38 = vadd.f32 1e-12, %v1570_v36  ;;  %v1569_v39 = vmul.f32 0.03125, %v1565_v37 }
 0xa82   : > { %2194 = vrsqrt.f32 %v1572_v38  ;;  %v1571_v40 = vadd.f32 1e-12, %v1569_v39 }
 0xa84   : > { %2196 = vrsqrt.f32 %v1571_v40 }
 0xa8f   : > { %v2195_v41 = vpop.eup %2194 }
 0xa90   : > { %v1576_v43 = vmul.f32 %v2195_v41, %v1560_v27 }
 0xa91   : > { %v2197_v44 = vpop.eup %2196 }
 0xa92   : > { %v1584_v46 = vmul.f32 %v1987_v42, %v1576_v43  ;;  %v1575_v47 = vmul.f32 %v2197_v44, %v1559_v29 }
 0xa94   : > { %v1592_v48 = vadd.f32 %v1988_v45, %v1584_v46  ;;  %v1583_v49 = vmul.f32 %v1987_v42, %v1575_v47 }
 0xa96   : > { %2106 = vmatpush3.msra.mxu0 %v1592_v48  ;;  %v1591_v50 = vadd.f32 %v1988_v45, %v1583_v49 }
 0xa97   : > { %2107 = vmatprep.subr.mxu0 %v2361_v34 }
 0xa98   : > { %2108 = vmatpush3.msra.mxu0 %v1591_v50 }
 0xa99   : > { %2110 = vmatmul.mubr.msk.f32.vlgmr.msra.gmra.mxu0 %vm1092_vm1, %v1593_v51 }
 0xb59   : > { %v1663_v52 = vpop.f32.mrf.mxu0 }
 0xb5a   : > { %v1667_v53 = vmul.f32 %v1663_v52, %v1663_v52 }
 0xb5b   : > { %v2111_v54 = vpop.f32.mrf.mxu0 }
 0xb5c   : > { %v1669_v55 = vsel %vm1668_vm4, %v1667_v53, 0.0 }
 0xb5d   : > { %1670 = vadd.xlane.f32.xlu0 %v1669_v55 }
 0xbe6   : > { %v1671_v56 = vpop.xlane.xlu0 %1670 }
 0xbe7   : > { %v1672_v57 = vmax.f32 %v1671_v56, 1e-24 }
 0xbe9   : > { %2198 = vrsqrt.f32 %v1672_v57 }
 0xbf6   : > { %v2199_v58 = vpop.eup %2198 }
 0xbf7   : > { %v1674_v59 = vmul.f32 %v2199_v58, %v1663_v52 }
 0xbf9   : > { %1675 = vst.msk [vmem:[%s810_s11] sm:$0x3] %vm1668_vm4, %v1674_v59 }
 0xbfa   : > { %2297 = shalt.err (!%p2294_p12)
}
 0xbfb   : > { %s2298_s29 = scalar_lea.hbm %s1688_s10, 32  ;;  %s2302_s12 = scalar_lea.hbm %s2872_s0, 64 }
 0xbfc   : > { %p2299_p0 = scmp.ne.s32.totalorder %s1688_s10, %s2298_s29  ;;  %p2303_p5 = scmp.lt.s32.totalorder %s1688_s10, %s2872_s0 }
 0xbfd   : > { %p2304_p2 = scmp.lt.s32.totalorder %s2302_s12, %s2298_s29 }
 0xbfe   : > { %p2300_p11 = pnand %p2299_p0, %p2873_p8 }
 0xbff   : > { %p2305_p13 = por %p2304_p2, %p2303_p5 }
 0xc00   : > { %p2301_p4 = pneg %p2300_p11 }
 0xc02   : > { %p2306_p7 = pnand %p2305_p13, %p2301_p4 }
 0xc04   : > { %2309 = shalt.err (!%p2306_p7)
}
 0xc05   : > { %2118 = dma.vmem_to_hbm [thread:$0]  (%p2873_p8), %s1691_s14, 32, %s1688_s10, %s1677_s15  }
 0xc06 PF: > { %s2874_s22 = sld [smem:[#allocation12_spill]]  ;;  %p2877_p1 = scmp.ge.s32.totalorder %s2352_s27, 2 }
 0xc07   : > { %s2875_s24 = sld [smem:[#allocation17_spill]] }
 0xc0c   : > { %s1702_s20 = sand.u32 1, %s2874_s22  }
 0xc0d   : > { %p2876_p10 = scmp.ne.s32.totalorder %s2875_s24, 0  ;;  %s1703_s21 = scalar_lea.sflag [#allocation4], %s1702_s20 }
 0xc0f   : > { %p2131_p3 = pnand %p2877_p1, %p2876_p10 }
 0xc11   : > { %p2132_p9 = pneg %p2131_p3 }
 0xc13   : > { %2335 = dma.done.wait (%p2132_p9), %s1703_s21, 32  }
 0xc14   : > { %2337 = vsyncadd (%p2132_p9), %s1703_s21, 4294967264  ;;  %s2878_s27 = sld [smem:[#allocation14_spill]]  ;;  %s2881_s24 = smov %s2344_s25 }
 0xc15   : > { %s2879_s8 = sld [smem:[#allocation13_spill]] }
 0xc16   : > { %s2880_s26 = sld [smem:[#allocation15_spill]] }
 0xc1a   : > { %p33_p6 = scmp.ge.s32.totalorder %s2878_s27, 4  }
 0xc1b   : > { %s2882_s25 = smov %s2879_s8 }
 0xc1c   :  { %35 = sbr.rel (!%p33_p6) target bundleno = 21 (0x15), region = 199 }
 0xc21   :  { %1708 = vsyncpa [#allocation3], 1 }
 0xc22   :  { %1710 = vsyncpa [#allocation3 + $0x1], 1 }
 0xc23   :  { %1711 = vsyncpa [#allocation6], 1 }
 0xc24   :  { %1713 = vsyncpa [#allocation6 + $0x1], 1 }
 0xc25   :  { %1714 = vsyncpa [#allocation4], 1 }
 0xc26   :  { %1716 = vsyncpa [#allocation4 + $0x1], 1 }

</bundles_post_ra>
